<compile_context>
chip_gen: v5e
topology: v5e:2x2
jax: 0.10.0
libtpu: 0.0.40
codegen_flags: <defaults>
</compile_context>

<pallas_src>
import functools

import jax
import jax.numpy as jnp
from jax.experimental import pallas as pl
from jax.experimental.pallas import tpu as pltpu


BN_EPS = 1e-5
_LANE = 128
_SUBLANE = 8
_VMEM_LIMIT_BYTES = 64 * 1024 * 1024  # explicit scoped-VMEM budget (v5e/v6e/v7x safe)


def _round_up(x, m):
    return (x + m - 1) // m * m


# ---------------------------------------------------------------------------
# Phase 1 kernel: conv tile (im2col matmul on the MXU) + partial BN stats.
# ---------------------------------------------------------------------------
def _matmul_stats_kernel(p_ref, w_ref, y_ref, st_ref):
    """p_ref: (tile_m, K_pad) patches; w_ref: (K_pad, C_pad) weights;
    y_ref: (tile_m, C_pad) conv-output tile;
    st_ref: (8, C_pad) -- row 0 = per-channel sum, row 1 = per-channel sumsq.
    """
    y = jnp.dot(p_ref[...], w_ref[...], preferred_element_type=jnp.float32)
    y_ref[...] = y
    s = jnp.sum(y, axis=0, keepdims=True)       # (1, C_pad)
    q = jnp.sum(y * y, axis=0, keepdims=True)   # (1, C_pad)
    row = jax.lax.broadcasted_iota(jnp.int32, st_ref.shape, 0)
    st_ref[...] = jnp.where(row == 0, s, jnp.where(row == 1, q, 0.0))


# ---------------------------------------------------------------------------
# Phase 2 kernel: fused BatchNorm affine  out = y * scale + shift.
# ---------------------------------------------------------------------------
def _normalize_kernel(y_ref, scale_ref, shift_ref, o_ref):
    o_ref[...] = (y_ref[...] * scale_ref[...] + shift_ref[...]).astype(o_ref.dtype)


def _im2col_nhwc(x_nhwc, kh, kw, stride, padding):
    """NHWC input -> (N*Ho*Wo, kh*kw*C) patch matrix; K ordering = (kh, kw, C)."""
    N, H, W, C = x_nhwc.shape
    Ho = (H + 2 * padding - kh) // stride + 1
    Wo = (W + 2 * padding - kw) // stride + 1
    xp = jnp.pad(x_nhwc, ((0, 0), (padding, padding), (padding, padding), (0, 0)))
    cols = []
    for i in range(kh):
        for j in range(kw):
            cols.append(xp[:, i:i + stride * Ho:stride, j:j + stride * Wo:stride, :])
    patches = jnp.concatenate(cols, axis=-1).reshape(N * Ho * Wo, kh * kw * C)
    return patches, (N, Ho, Wo)


def _choose_tile_m(M, k_pad, c_pad):
    """Largest sublane-aligned M tile whose double-buffered in/out footprint
    fits a conservative per-call budget (sized so it also works on v7x)."""
    budget = 8 * 1024 * 1024
    per_row_bytes = 4 * (k_pad + 2 * c_pad)     # patches in + y out (+ reuse in phase 2)
    t = budget // (2 * per_row_bytes)           # x2: double buffering
    t = max(_SUBLANE, min(1024, (t // _SUBLANE) * _SUBLANE))
    return min(t, _round_up(M, _SUBLANE))


def _conv_bn_stage(x_nhwc, weight_oihw, gamma, beta, stride, padding, tile_m=None):
    """One Conv2d(bias=False) + BatchNorm2d (training mode) stage, NHWC in/out."""
    N, H, W, C_in = x_nhwc.shape
    C_out, C_in_w, kh, kw = weight_oihw.shape
    assert C_in_w == C_in, (C_in_w, C_in)

    patches, (N, Ho, Wo) = _im2col_nhwc(x_nhwc, kh, kw, stride, padding)
    M, K = patches.shape
    K_pad = _round_up(K, _LANE)
    C_pad = _round_up(C_out, _LANE)

    if tile_m is None:
        tile_m = _choose_tile_m(M, K_pad, C_pad)
    M_pad = _round_up(M, tile_m)
    num_tiles = M_pad // tile_m

    # Zero-pad: padded rows / K entries / channels contribute exactly zero to
    # the matmul and to the BN partial sums, so semantics are unchanged.
    patches_p = jnp.pad(patches.astype(jnp.float32),
                        ((0, M_pad - M), (0, K_pad - K)))
    # OIHW -> (kh, kw, C_in, C_out) -> (K, C_out): matches the patch K ordering.
    w_mat = jnp.transpose(weight_oihw, (2, 3, 1, 0)).reshape(K, C_out)
    w_p = jnp.pad(w_mat.astype(jnp.float32), ((0, K_pad - K), (0, C_pad - C_out)))
    # TODO(synk): on v6e/v7x the MXU inputs could be cast to bf16 here (keeping
    # the f32 accumulator) to halve HBM/VMEM traffic; f32 kept to match the
    # f32 reference tolerance.

    cost1 = pl.CostEstimate(
        flops=2 * M_pad * K_pad * C_pad,
        transcendentals=0,
        bytes_accessed=4 * (M_pad * K_pad + K_pad * C_pad
                            + M_pad * C_pad + num_tiles * 8 * C_pad))

    y, stats = pl.pallas_call(
        _matmul_stats_kernel,
        out_shape=(jax.ShapeDtypeStruct((M_pad, C_pad), jnp.float32),
                   jax.ShapeDtypeStruct((num_tiles * 8, C_pad), jnp.float32)),
        grid_spec=pltpu.PrefetchScalarGridSpec(
            num_scalar_prefetch=0,
            grid=(num_tiles,),
            in_specs=[pl.BlockSpec((tile_m, K_pad), lambda i: (i, 0)),
                      pl.BlockSpec((K_pad, C_pad), lambda i: (0, 0))],
            out_specs=(pl.BlockSpec((tile_m, C_pad), lambda i: (i, 0)),
                       pl.BlockSpec((8, C_pad), lambda i: (i, 0)))),
        compiler_params=pltpu.CompilerParams(
            dimension_semantics=("parallel",),
            vmem_limit_bytes=_VMEM_LIMIT_BYTES),
        cost_estimate=cost1,
    )(patches_p, w_p)

    # Combine the tiny per-tile partials into exact batch statistics.
    stats = stats.reshape(num_tiles, 8, C_pad)
    tot = jnp.sum(stats[:, 0, :], axis=0)
    totsq = jnp.sum(stats[:, 1, :], axis=0)
    mean = tot / M                                        # real row count, not M_pad
    var = jnp.maximum(totsq / M - mean * mean, 0.0)       # biased variance
    inv_std = jax.lax.rsqrt(var + BN_EPS)

    g = jnp.pad(gamma.astype(jnp.float32), (0, C_pad - C_out))
    b = jnp.pad(beta.astype(jnp.float32), (0, C_pad - C_out))
    scale = (g * inv_std).reshape(1, C_pad)
    shift = (b - mean * g * inv_std).reshape(1, C_pad)

    cost2 = pl.CostEstimate(
        flops=2 * M_pad * C_pad,
        transcendentals=0,
        bytes_accessed=4 * (2 * M_pad * C_pad + 2 * C_pad))

    out = pl.pallas_call(
        _normalize_kernel,
        out_shape=jax.ShapeDtypeStruct((M_pad, C_pad), jnp.float32),
        grid_spec=pltpu.PrefetchScalarGridSpec(
            num_scalar_prefetch=0,
            grid=(num_tiles,),
            in_specs=[pl.BlockSpec((tile_m, C_pad), lambda i: (i, 0)),
                      pl.BlockSpec((1, C_pad), lambda i: (0, 0)),
                      pl.BlockSpec((1, C_pad), lambda i: (0, 0))],
            out_specs=pl.BlockSpec((tile_m, C_pad), lambda i: (i, 0))),
        compiler_params=pltpu.CompilerParams(
            dimension_semantics=("parallel",),
            vmem_limit_bytes=_VMEM_LIMIT_BYTES),
        cost_estimate=cost2,
    )(y, scale, shift)

    return out[:M, :C_out].reshape(N, Ho, Wo, C_out)


@functools.partial(jax.jit, static_argnames=("stride", "padding", "tile_m"))
def van_conv_forward(x_nchw, w1, g1, b1, w2, g2, b2, *, stride, padding, tile_m=None):
    # NCHW -> NHWC once; both stages operate in NHWC; back to NCHW at the end.
    x = jnp.transpose(x_nchw, (0, 2, 3, 1))
    y = _conv_bn_stage(x, w1, g1, b1, stride, padding, tile_m)
    y = _conv_bn_stage(y, w2, g2, b2, 1, padding, tile_m)   # 2nd conv: stride=1, dilation=1
    return jnp.transpose(y, (0, 3, 1, 2))


def _reference_forward(x, w1, g1, b1, w2, g2, b2, stride, padding):
    """Pure-JAX reference (lax.conv + training-mode BN) for validation."""
    def stage(x, w, g, b, s):
        dn = jax.lax.conv_dimension_numbers(x.shape, w.shape, ("NCHW", "OIHW", "NCHW"))
        y = jax.lax.conv_general_dilated(
            x, w, (s, s), [(padding, padding), (padding, padding)],
            dimension_numbers=dn)
        mean = y.mean(axis=(0, 2, 3), keepdims=True)
        var = ((y - mean) ** 2).mean(axis=(0, 2, 3), keepdims=True)
        return ((y - mean) * jax.lax.rsqrt(var + BN_EPS)
                * g.reshape(1, -1, 1, 1) + b.reshape(1, -1, 1, 1))
    y = stage(x, w1, g1, b1, stride)
    return stage(y, w2, g2, b2, 1)


if __name__ == "__main__":
    # Small shapes consistent with the module: N=2, C_in=4, H=W=16,
    # C_out=8, kernel_size=3, stride=1, padding=1.
    N, C_in, H, W = 2, 4, 16, 16
    C_out, ksz, stride, padding = 8, 3, 1, 1

    key = jax.random.PRNGKey(0)
    kx, kw1, kw2 = jax.random.split(key, 3)

    x = jax.random.normal(kx, (N, C_in, H, W), dtype=jnp.float32)
    fan1 = C_in * ksz * ksz
    fan2 = C_out * ksz * ksz
    w1 = jax.random.normal(kw1, (C_out, C_in, ksz, ksz), jnp.float32) * (2.0 / fan1) ** 0.5
    w2 = jax.random.normal(kw2, (C_out, C_out, ksz, ksz), jnp.float32) * (2.0 / fan2) ** 0.5
    g1 = jnp.ones((C_out,), jnp.float32)
    b1 = jnp.zeros((C_out,), jnp.float32)
    g2 = jnp.ones((C_out,), jnp.float32)
    b2 = jnp.zeros((C_out,), jnp.float32)

    ref = _reference_forward(x, w1, g1, b1, w2, g2, b2, stride, padding)

    # Default tile (single M tile at this size).
    out = van_conv_forward(x, w1, g1, b1, w2, g2, b2,
                           stride=stride, padding=padding)
    out = jax.block_until_ready(out)
    assert out.shape == (N, C_out, H, W), out.shape
    assert jnp.allclose(out, ref, atol=2e-4, rtol=2e-4), float(jnp.abs(out - ref).max())

    # Force a smaller tile to exercise the multi-tile grid + partial-stats path.
    out2 = van_conv_forward(x, w1, g1, b1, w2, g2, b2,
                            stride=stride, padding=padding, tile_m=256)
    out2 = jax.block_until_ready(out2)
    assert jnp.allclose(out2, ref, atol=2e-4, rtol=2e-4), float(jnp.abs(out2 - ref).max())

    print("KERNEL_OK")
</pallas_src>

<mosaic_0001>
module attributes {stable_mosaic.version = 11 : i64} {
  func.func @_matmul_stats_kernel(%arg0: i32, %arg1: memref<512x128xf32, #tpu.memory_space<vmem>>, %arg2: memref<128x128xf32, #tpu.memory_space<vmem>>, %arg3: memref<512x128xf32, #tpu.memory_space<vmem>>, %arg4: memref<8x128xf32, #tpu.memory_space<vmem>>) attributes {dimension_semantics = [#tpu.dimension_semantics<parallel>], iteration_bounds = array<i64: 1>, scalar_prefetch = 0 : i64, scratch_operands = 0 : i64, tpu.core_type = #tpu.core_type<tc>, window_params = [{transform_indices = @transform_0, window_bounds = array<i64: 512, 128>}, {pipeline_mode = #tpu.pipeline_mode<synchronous>, transform_indices = @transform_1, window_bounds = array<i64: 128, 128>}, {transform_indices = @transform_2, window_bounds = array<i64: 512, 128>}, {transform_indices = @transform_3, window_bounds = array<i64: 8, 128>}]} {
    %c0 = arith.constant 0 : index
    %c0_0 = arith.constant 0 : index
    %0 = vector.load %arg1[%c0, %c0_0] : memref<512x128xf32, #tpu.memory_space<vmem>>, vector<512x128xf32>
    %c0_1 = arith.constant 0 : index
    %c0_2 = arith.constant 0 : index
    %1 = vector.load %arg2[%c0_1, %c0_2] : memref<128x128xf32, #tpu.memory_space<vmem>>, vector<128x128xf32>
    %cst = arith.constant dense<0.000000e+00> : vector<512x128xf32>
    %2 = tpu.matmul %0, %1, %cst {dimension_numbers = #tpu.dot_dimension_numbers<[1], [0], [0], [1], [0, 0, 1, 1], [], []>} : vector<512x128xf32>, vector<128x128xf32>, vector<512x128xf32> -> vector<512x128xf32>
    %c0_3 = arith.constant 0 : index
    %c0_4 = arith.constant 0 : index
    %3 = vector.load %arg3[%c0_3, %c0_4] : memref<512x128xf32, #tpu.memory_space<vmem>>, vector<512x128xf32>
    tpu.vector_store %arg3[%c0_3, %c0_4], %2 {strides = array<i32>} : memref<512x128xf32, #tpu.memory_space<vmem>>, vector<512x128xf32>,
    %cst_5 = arith.constant dense<0.000000e+00> : vector<128xf32>
    %4 = vector.multi_reduction <add>, %2, %cst_5 [0] : vector<512x128xf32> to vector<128xf32>
    %5 = vector.shape_cast %4 : vector<128xf32> to vector<1x128xf32>
    %6 = arith.mulf %2, %2 : vector<512x128xf32>
    %cst_6 = arith.constant dense<0.000000e+00> : vector<128xf32>
    %7 = vector.multi_reduction <add>, %6, %cst_6 [0] : vector<512x128xf32> to vector<128xf32>
    %8 = vector.shape_cast %7 : vector<128xf32> to vector<1x128xf32>
    %9 = tpu.iota {dimensions = array<i32: 0>} : vector<8x128xi32>
    %c0_i32 = arith.constant 0 : i32
    %10 = vector.broadcast %c0_i32 : i32 to vector<8x128xi32>
    %11 = arith.cmpi eq, %9, %10 : vector<8x128xi32>
    %c1_i32 = arith.constant 1 : i32
    %12 = vector.broadcast %c1_i32 : i32 to vector<8x128xi32>
    %13 = arith.cmpi eq, %9, %12 : vector<8x128xi32>
    %cst_7 = arith.constant 0.000000e+00 : f32
    %14 = vector.shape_cast %8 : vector<1x128xf32> to vector<1x128xf32>
    %15 = vector.broadcast %14 : vector<1x128xf32> to vector<8x128xf32>
    %16 = vector.broadcast %cst_7 : f32 to vector<8x128xf32>
    %17 = arith.select %13, %15, %16 : vector<8x128xi1>, vector<8x128xf32>
    %18 = vector.shape_cast %5 : vector<1x128xf32> to vector<1x128xf32>
    %19 = vector.broadcast %18 : vector<1x128xf32> to vector<8x128xf32>
    %20 = arith.select %11, %19, %17 : vector<8x128xi1>, vector<8x128xf32>
    %c0_8 = arith.constant 0 : index
    %c0_9 = arith.constant 0 : index
    %21 = vector.load %arg4[%c0_8, %c0_9] : memref<8x128xf32, #tpu.memory_space<vmem>>, vector<8x128xf32>
    tpu.vector_store %arg4[%c0_8, %c0_9], %20 {strides = array<i32>} : memref<8x128xf32, #tpu.memory_space<vmem>>, vector<8x128xf32>,
    return
  }
  func.func @transform_0(%arg0: i32) -> (i32, i32) {
    %c0_i32 = arith.constant 0 : i32
    %c0_i32_0 = arith.constant 0 : i32
    return %arg0, %c0_i32 : i32, i32
  }
  func.func @transform_1(%arg0: i32) -> (i32, i32) {
    %c0_i32 = arith.constant 0 : i32
    %c0_i32_0 = arith.constant 0 : i32
    %c0_i32_1 = arith.constant 0 : i32
    return %c0_i32, %c0_i32_0 : i32, i32
  }
  func.func @transform_2(%arg0: i32) -> (i32, i32) {
    %c0_i32 = arith.constant 0 : i32
    %c0_i32_0 = arith.constant 0 : i32
    return %arg0, %c0_i32 : i32, i32
  }
  func.func @transform_3(%arg0: i32) -> (i32, i32) {
    %c0_i32 = arith.constant 0 : i32
    %c0_i32_0 = arith.constant 0 : i32
    return %arg0, %c0_i32 : i32, i32
  }
}

module attributes {stable_mosaic.version = 11 : i64} {
  func.func @_normalize_kernel(%arg0: i32, %arg1: memref<512x128xf32, #tpu.memory_space<vmem>>, %arg2: memref<1x128xf32, #tpu.memory_space<vmem>>, %arg3: memref<1x128xf32, #tpu.memory_space<vmem>>, %arg4: memref<512x128xf32, #tpu.memory_space<vmem>>) attributes {dimension_semantics = [#tpu.dimension_semantics<parallel>], iteration_bounds = array<i64: 1>, scalar_prefetch = 0 : i64, scratch_operands = 0 : i64, tpu.core_type = #tpu.core_type<tc>, window_params = [{transform_indices = @transform_0, window_bounds = array<i64: 512, 128>}, {pipeline_mode = #tpu.pipeline_mode<synchronous>, transform_indices = @transform_1, window_bounds = array<i64: 1, 128>}, {pipeline_mode = #tpu.pipeline_mode<synchronous>, transform_indices = @transform_2, window_bounds = array<i64: 1, 128>}, {transform_indices = @transform_3, window_bounds = array<i64: 512, 128>}]} {
    %c0 = arith.constant 0 : index
    %c0_0 = arith.constant 0 : index
    %0 = vector.load %arg1[%c0, %c0_0] : memref<512x128xf32, #tpu.memory_space<vmem>>, vector<512x128xf32>
    %c0_1 = arith.constant 0 : index
    %c0_2 = arith.constant 0 : index
    %1 = vector.load %arg2[%c0_1, %c0_2] : memref<1x128xf32, #tpu.memory_space<vmem>>, vector<1x128xf32>
    %2 = vector.broadcast %1 : vector<1x128xf32> to vector<512x128xf32>
    %3 = arith.mulf %0, %2 : vector<512x128xf32>
    %c0_3 = arith.constant 0 : index
    %c0_4 = arith.constant 0 : index
    %4 = vector.load %arg3[%c0_3, %c0_4] : memref<1x128xf32, #tpu.memory_space<vmem>>, vector<1x128xf32>
    %5 = vector.broadcast %4 : vector<1x128xf32> to vector<512x128xf32>
    %6 = arith.addf %3, %5 : vector<512x128xf32>
    %c0_5 = arith.constant 0 : index
    %c0_6 = arith.constant 0 : index
    %7 = vector.load %arg4[%c0_5, %c0_6] : memref<512x128xf32, #tpu.memory_space<vmem>>, vector<512x128xf32>
    tpu.vector_store %arg4[%c0_5, %c0_6], %6 {strides = array<i32>} : memref<512x128xf32, #tpu.memory_space<vmem>>, vector<512x128xf32>,
    return
  }
  func.func @transform_0(%arg0: i32) -> (i32, i32) {
    %c0_i32 = arith.constant 0 : i32
    %c0_i32_0 = arith.constant 0 : i32
    return %arg0, %c0_i32 : i32, i32
  }
  func.func @transform_1(%arg0: i32) -> (i32, i32) {
    %c0_i32 = arith.constant 0 : i32
    %c0_i32_0 = arith.constant 0 : i32
    %c0_i32_1 = arith.constant 0 : i32
    return %c0_i32, %c0_i32_0 : i32, i32
  }
  func.func @transform_2(%arg0: i32) -> (i32, i32) {
    %c0_i32 = arith.constant 0 : i32
    %c0_i32_0 = arith.constant 0 : i32
    %c0_i32_1 = arith.constant 0 : i32
    return %c0_i32, %c0_i32_0 : i32, i32
  }
  func.func @transform_3(%arg0: i32) -> (i32, i32) {
    %c0_i32 = arith.constant 0 : i32
    %c0_i32_0 = arith.constant 0 : i32
    return %arg0, %c0_i32 : i32, i32
  }
}

</mosaic_0001>

<bundles_post_ra>
// kernel: van_conv_forward.5
= control target key start
LH: loop header
LB: loop body
LE: loop exit
PB: predicated region body
PF: predicated region fallthrough
CT: control target
= control target key end

     0   :  { %s829_s0 = inlined_call_operand.vmem [shape: f32[512,128], index: 0, kind: input, shape index: {}]   ;;  %s830_s1 = inlined_call_operand.vmem [shape: f32[1,128], index: 1, kind: input, shape index: {}]   ;;  %s831_s2 = inlined_call_operand.vmem [shape: f32[1,128], index: 2, kind: input, shape index: {}]   ;;  %s832_s3 = inlined_call_operand.vmem [shape: f32[512,128], index: 3, kind: output, shape index: {}]  }
   0x1   :  { %v14_v0 = vld [vmem:[%s829_s0] sm:$0xff]  ;;  %v15_v3 = vld [vmem:[%s829_s0 + $0x8] sm:$0xff]  ;;  %v16_v6 = vld [vmem:[%s829_s0 + $0x10] sm:$0xff] }
   0x2   :  { %v310_v1 = vld [vmem:[%s830_s1] ss:$0 sm:$0xff]  ;;  %v17_v7 = vld [vmem:[%s829_s0 + $0x18] sm:$0xff]  ;;  %v19_v12 = vld [vmem:[%s829_s0 + $0x28] sm:$0xff] }
   0x3   :  { %v315_v2 = vld [vmem:[%s831_s2] ss:$0 sm:$0xff]  ;;  %v82_v4 = vmul.f32 %v310_v1, %v14_v0  ;;  %v83_v5 = vmul.f32 %v310_v1, %v15_v3  ;;  %v84_v9 = vmul.f32 %v310_v1, %v16_v6  ;;  %v85_v10 = vmul.f32 %v310_v1, %v17_v7  ;;  %v20_v13 = vld [vmem:[%s829_s0 + $0x30] sm:$0xff]  ;;  %v21_v14 = vld [vmem:[%s829_s0 + $0x38] sm:$0xff] }
   0x4   :  { %v18_v8 = vld [vmem:[%s829_s0 + $0x20] sm:$0xff]  ;;  %v87_v17 = vmul.f32 %v310_v1, %v19_v12  ;;  %v88_v18 = vmul.f32 %v310_v1, %v20_v13  ;;  %v23_v20 = vld [vmem:[%s829_s0 + $0x48] sm:$0xff]  ;;  %v89_v23 = vmul.f32 %v310_v1, %v21_v14  ;;  %v24_v24 = vld [vmem:[%s829_s0 + $0x50] sm:$0xff] }
   0x5   :  { %v86_v11 = vmul.f32 %v310_v1, %v18_v8  ;;  %v150_v15 = vadd.f32 %v315_v2, %v82_v4  ;;  %v151_v16 = vadd.f32 %v315_v2, %v83_v5  ;;  %v22_v19 = vld [vmem:[%s829_s0 + $0x40] sm:$0xff]  ;;  %v152_v21 = vadd.f32 %v315_v2, %v84_v9  ;;  %v25_v27 = vld [vmem:[%s829_s0 + $0x58] sm:$0xff]  ;;  %v27_v33 = vld [vmem:[%s829_s0 + $0x68] sm:$0xff] }
   0x6   :  { %v153_v22 = vadd.f32 %v315_v2, %v85_v10  ;;  %v90_v26 = vmul.f32 %v310_v1, %v22_v19  ;;  %v155_v28 = vadd.f32 %v315_v2, %v87_v17  ;;  %v91_v29 = vmul.f32 %v310_v1, %v23_v20  ;;  %v26_v30 = vld [vmem:[%s829_s0 + $0x60] sm:$0xff]  ;;  %v28_v36 = vld [vmem:[%s829_s0 + $0x70] sm:$0xff]  ;;  %v29_v39 = vld [vmem:[%s829_s0 + $0x78] sm:$0xff] }
   0x7   :  { %214 = vst [vmem:[%s832_s3] sm:$0xff] %v150_v15  ;;  %v154_v25 = vadd.f32 %v315_v2, %v86_v11  ;;  %v156_v31 = vadd.f32 %v315_v2, %v88_v18  ;;  %v92_v32 = vmul.f32 %v310_v1, %v24_v24  ;;  %v157_v34 = vadd.f32 %v315_v2, %v89_v23  ;;  %v30_v42 = vld [vmem:[%s829_s0 + $0x80] sm:$0xff]  ;;  %v31_v45 = vld [vmem:[%s829_s0 + $0x88] sm:$0xff]  ;;  %v32_v48 = vld [vmem:[%s829_s0 + $0x90] sm:$0xff] }
   0x8   :  { %215 = vst [vmem:[%s832_s3 + $0x8] sm:$0xff] %v151_v16  ;;  %v93_v35 = vmul.f32 %v310_v1, %v25_v27  ;;  %v158_v37 = vadd.f32 %v315_v2, %v90_v26  ;;  %v94_v38 = vmul.f32 %v310_v1, %v26_v30  ;;  %v159_v40 = vadd.f32 %v315_v2, %v91_v29  ;;  %v33_v51 = vld [vmem:[%s829_s0 + $0x98] sm:$0xff]  ;;  %v34_v54 = vld [vmem:[%s829_s0 + $0xa0] sm:$0xff]  ;;  %v35_v57 = vld [vmem:[%s829_s0 + $0xa8] sm:$0xff] }
   0x9   :  { %216 = vst [vmem:[%s832_s3 + $0x10] sm:$0xff] %v152_v21  ;;  %v95_v41 = vmul.f32 %v310_v1, %v27_v33  ;;  %v160_v43 = vadd.f32 %v315_v2, %v92_v32  ;;  %v96_v44 = vmul.f32 %v310_v1, %v28_v36  ;;  %v97_v47 = vmul.f32 %v310_v1, %v29_v39  ;;  %v36_v60 = vld [vmem:[%s829_s0 + $0xb0] sm:$0xff]  ;;  %v37_v63 = vld [vmem:[%s829_s0 + $0xb8] sm:$0xff]  ;;  %v38_v4 = vld [vmem:[%s829_s0 + $0xc0] sm:$0xff] }
   0xa   :  { %217 = vst [vmem:[%s832_s3 + $0x18] sm:$0xff] %v153_v22  ;;  %v161_v46 = vadd.f32 %v315_v2, %v93_v35  ;;  %v162_v49 = vadd.f32 %v315_v2, %v94_v38  ;;  %v98_v50 = vmul.f32 %v310_v1, %v30_v42  ;;  %v99_v53 = vmul.f32 %v310_v1, %v31_v45  ;;  %v39_v7 = vld [vmem:[%s829_s0 + $0xc8] sm:$0xff]  ;;  %v40_v10 = vld [vmem:[%s829_s0 + $0xd0] sm:$0xff]  ;;  %v41_v13 = vld [vmem:[%s829_s0 + $0xd8] sm:$0xff] }
   0xb   :  { %218 = vst [vmem:[%s832_s3 + $0x20] sm:$0xff] %v154_v25  ;;  %v163_v52 = vadd.f32 %v315_v2, %v95_v41  ;;  %v164_v55 = vadd.f32 %v315_v2, %v96_v44  ;;  %v100_v56 = vmul.f32 %v310_v1, %v32_v48  ;;  %v165_v58 = vadd.f32 %v315_v2, %v97_v47  ;;  %v42_v16 = vld [vmem:[%s829_s0 + $0xe0] sm:$0xff]  ;;  %v43_v19 = vld [vmem:[%s829_s0 + $0xe8] sm:$0xff]  ;;  %v44_v22 = vld [vmem:[%s829_s0 + $0xf0] sm:$0xff] }
   0xc   :  { %219 = vst [vmem:[%s832_s3 + $0x28] sm:$0xff] %v155_v28  ;;  %v101_v59 = vmul.f32 %v310_v1, %v33_v51  ;;  %v166_v61 = vadd.f32 %v315_v2, %v98_v50  ;;  %v102_v62 = vmul.f32 %v310_v1, %v34_v54  ;;  %v167_v0 = vadd.f32 %v315_v2, %v99_v53  ;;  %v45_v25 = vld [vmem:[%s829_s0 + $0xf8] sm:$0xff]  ;;  %v46_v28 = vld [vmem:[%s829_s0 + $0x100] sm:$0xff]  ;;  %v51_v44 = vld [vmem:[%s829_s0 + $0x128] sm:$0xff] }
   0xd   :  { %220 = vst [vmem:[%s832_s3 + $0x30] sm:$0xff] %v156_v31  ;;  %v103_v3 = vmul.f32 %v310_v1, %v35_v57  ;;  %v168_v5 = vadd.f32 %v315_v2, %v100_v56  ;;  %v104_v6 = vmul.f32 %v310_v1, %v36_v60  ;;  %v105_v9 = vmul.f32 %v310_v1, %v37_v63  ;;  %v47_v31 = vld [vmem:[%s829_s0 + $0x108] sm:$0xff]  ;;  %v77_v41 = vld [vmem:[%s829_s0 + $0x1f8] sm:$0xff]  ;;  %v52_v47 = vld [vmem:[%s829_s0 + $0x130] sm:$0xff] }
   0xe   :  { %221 = vst [vmem:[%s832_s3 + $0x38] sm:$0xff] %v157_v34  ;;  %v169_v8 = vadd.f32 %v315_v2, %v101_v59  ;;  %v170_v11 = vadd.f32 %v315_v2, %v102_v62  ;;  %v106_v12 = vmul.f32 %v310_v1, %v38_v4  ;;  %v107_v15 = vmul.f32 %v310_v1, %v39_v7  ;;  %v48_v34 = vld [vmem:[%s829_s0 + $0x110] sm:$0xff]  ;;  %v53_v51 = vld [vmem:[%s829_s0 + $0x138] sm:$0xff]  ;;  %v54_v54 = vld [vmem:[%s829_s0 + $0x140] sm:$0xff] }
   0xf   :  { %222 = vst [vmem:[%s832_s3 + $0x40] sm:$0xff] %v158_v37  ;;  %v171_v14 = vadd.f32 %v315_v2, %v103_v3  ;;  %v172_v17 = vadd.f32 %v315_v2, %v104_v6  ;;  %v108_v18 = vmul.f32 %v310_v1, %v40_v10  ;;  %v173_v20 = vadd.f32 %v315_v2, %v105_v9  ;;  %v49_v37 = vld [vmem:[%s829_s0 + $0x118] sm:$0xff] }
  0x10   :  { %223 = vst [vmem:[%s832_s3 + $0x48] sm:$0xff] %v159_v40  ;;  %v109_v21 = vmul.f32 %v310_v1, %v41_v13  ;;  %v174_v23 = vadd.f32 %v315_v2, %v106_v12  ;;  %v110_v24 = vmul.f32 %v310_v1, %v42_v16  ;;  %v175_v26 = vadd.f32 %v315_v2, %v107_v15  ;;  %v50_v40 = vld [vmem:[%s829_s0 + $0x120] sm:$0xff] }
  0x11   :  { %224 = vst [vmem:[%s832_s3 + $0x50] sm:$0xff] %v160_v43  ;;  %v111_v27 = vmul.f32 %v310_v1, %v43_v19  ;;  %v176_v29 = vadd.f32 %v315_v2, %v108_v18  ;;  %v112_v30 = vmul.f32 %v310_v1, %v44_v22  ;;  %v113_v33 = vmul.f32 %v310_v1, %v45_v25 }
  0x12   :  { %225 = vst [vmem:[%s832_s3 + $0x58] sm:$0xff] %v161_v46  ;;  %v177_v32 = vadd.f32 %v315_v2, %v109_v21  ;;  %v178_v35 = vadd.f32 %v315_v2, %v110_v24  ;;  %v114_v36 = vmul.f32 %v310_v1, %v46_v28  ;;  %v115_v39 = vmul.f32 %v310_v1, %v47_v31 }
  0x13   :  { %226 = vst [vmem:[%s832_s3 + $0x60] sm:$0xff] %v162_v49  ;;  %v179_v38 = vadd.f32 %v315_v2, %v111_v27  ;;  %v180_v42 = vadd.f32 %v315_v2, %v112_v30  ;;  %v116_v43 = vmul.f32 %v310_v1, %v48_v34  ;;  %v181_v45 = vadd.f32 %v315_v2, %v113_v33 }
  0x14   :  { %227 = vst [vmem:[%s832_s3 + $0x68] sm:$0xff] %v163_v52  ;;  %v117_v46 = vmul.f32 %v310_v1, %v49_v37  ;;  %v145_v48 = vmul.f32 %v310_v1, %v77_v41  ;;  %v182_v49 = vadd.f32 %v315_v2, %v114_v36  ;;  %v118_v50 = vmul.f32 %v310_v1, %v50_v40  ;;  %v70_v41 = vld [vmem:[%s829_s0 + $0x1c0] sm:$0xff] }
  0x15   :  { %228 = vst [vmem:[%s832_s3 + $0x70] sm:$0xff] %v164_v55  ;;  %v183_v52 = vadd.f32 %v315_v2, %v115_v39  ;;  %v119_v53 = vmul.f32 %v310_v1, %v51_v44  ;;  %v184_v56 = vadd.f32 %v315_v2, %v116_v43  ;;  %v120_v57 = vmul.f32 %v310_v1, %v52_v47  ;;  %v71_v44 = vld [vmem:[%s829_s0 + $0x1c8] sm:$0xff]  ;;  %v72_v47 = vld [vmem:[%s829_s0 + $0x1d0] sm:$0xff] }
  0x16   :  { %229 = vst [vmem:[%s832_s3 + $0x78] sm:$0xff] %v165_v58  ;;  %v604_v55 = vadd.f32 %v315_v2, %v145_v48  ;;  %v55_v58 = vld [vmem:[%s829_s0 + $0x148] sm:$0xff]  ;;  %v185_v59 = vadd.f32 %v315_v2, %v117_v46  ;;  %v121_v60 = vmul.f32 %v310_v1, %v53_v51  ;;  %v186_v62 = vadd.f32 %v315_v2, %v118_v50  ;;  %v73_v50 = vld [vmem:[%s829_s0 + $0x1d8] sm:$0xff] }
  0x17   :  { %230 = vst [vmem:[%s832_s3 + $0x80] sm:$0xff] %v166_v61  ;;  %v56_v61 = vld [vmem:[%s829_s0 + $0x150] sm:$0xff]  ;;  %v122_v63 = vmul.f32 %v310_v1, %v54_v54  ;;  %v187_v3 = vadd.f32 %v315_v2, %v119_v53  ;;  %v123_v4 = vmul.f32 %v310_v1, %v55_v58  ;;  %v188_v6 = vadd.f32 %v315_v2, %v120_v57  ;;  %v74_v53 = vld [vmem:[%s829_s0 + $0x1e0] sm:$0xff]  ;;  %v75_v57 = vld [vmem:[%s829_s0 + $0x1e8] sm:$0xff] }
  0x18   :  { %231 = vst [vmem:[%s832_s3 + $0x88] sm:$0xff] %v167_v0  ;;  %v57_v0 = vld [vmem:[%s829_s0 + $0x158] sm:$0xff]  ;;  %v124_v7 = vmul.f32 %v310_v1, %v56_v61  ;;  %v189_v9 = vadd.f32 %v315_v2, %v121_v60  ;;  %v76_v60 = vld [vmem:[%s829_s0 + $0x1f0] sm:$0xff] }
  0x19   :  { %232 = vst [vmem:[%s832_s3 + $0x90] sm:$0xff] %v168_v5  ;;  %v58_v5 = vld [vmem:[%s829_s0 + $0x160] sm:$0xff]  ;;  %v125_v10 = vmul.f32 %v310_v1, %v57_v0  ;;  %v190_v12 = vadd.f32 %v315_v2, %v122_v63  ;;  %v191_v15 = vadd.f32 %v315_v2, %v123_v4  ;;  %v143_v0 = vmul.f32 %v310_v1, %v75_v57 }
  0x1a   :  { %233 = vst [vmem:[%s832_s3 + $0x98] sm:$0xff] %v169_v8  ;;  %v59_v8 = vld [vmem:[%s829_s0 + $0x168] sm:$0xff]  ;;  %v126_v13 = vmul.f32 %v310_v1, %v58_v5  ;;  %v192_v18 = vadd.f32 %v315_v2, %v124_v7  ;;  %v144_v4 = vmul.f32 %v310_v1, %v76_v60 }
  0x1b   :  { %234 = vst [vmem:[%s832_s3 + $0xa0] sm:$0xff] %v170_v11  ;;  %v60_v11 = vld [vmem:[%s829_s0 + $0x170] sm:$0xff]  ;;  %v127_v16 = vmul.f32 %v310_v1, %v59_v8  ;;  %v193_v21 = vadd.f32 %v315_v2, %v125_v10  ;;  %v211_v7 = vadd.f32 %v315_v2, %v143_v0 }
  0x1c   :  { %235 = vst [vmem:[%s832_s3 + $0xa8] sm:$0xff] %v171_v14  ;;  %v61_v14 = vld [vmem:[%s829_s0 + $0x178] sm:$0xff]  ;;  %v128_v19 = vmul.f32 %v310_v1, %v60_v11  ;;  %v194_v24 = vadd.f32 %v315_v2, %v126_v13 }
  0x1d   :  { %236 = vst [vmem:[%s832_s3 + $0xb0] sm:$0xff] %v172_v17  ;;  %v62_v17 = vld [vmem:[%s829_s0 + $0x180] sm:$0xff]  ;;  %v129_v22 = vmul.f32 %v310_v1, %v61_v14  ;;  %v195_v27 = vadd.f32 %v315_v2, %v127_v16 }
  0x1e   :  { %237 = vst [vmem:[%s832_s3 + $0xb8] sm:$0xff] %v173_v20  ;;  %v63_v20 = vld [vmem:[%s829_s0 + $0x188] sm:$0xff]  ;;  %v130_v25 = vmul.f32 %v310_v1, %v62_v17  ;;  %v196_v30 = vadd.f32 %v315_v2, %v128_v19 }
  0x1f   :  { %238 = vst [vmem:[%s832_s3 + $0xc0] sm:$0xff] %v174_v23  ;;  %v64_v23 = vld [vmem:[%s829_s0 + $0x190] sm:$0xff]  ;;  %v131_v28 = vmul.f32 %v310_v1, %v63_v20  ;;  %v197_v33 = vadd.f32 %v315_v2, %v129_v22 }
  0x20   :  { %239 = vst [vmem:[%s832_s3 + $0xc8] sm:$0xff] %v175_v26  ;;  %v65_v26 = vld [vmem:[%s829_s0 + $0x198] sm:$0xff]  ;;  %v132_v31 = vmul.f32 %v310_v1, %v64_v23  ;;  %v198_v36 = vadd.f32 %v315_v2, %v130_v25 }
  0x21   :  { %240 = vst [vmem:[%s832_s3 + $0xd0] sm:$0xff] %v176_v29  ;;  %v66_v29 = vld [vmem:[%s829_s0 + $0x1a0] sm:$0xff]  ;;  %v133_v34 = vmul.f32 %v310_v1, %v65_v26  ;;  %v199_v39 = vadd.f32 %v315_v2, %v131_v28 }
  0x22   :  { %241 = vst [vmem:[%s832_s3 + $0xd8] sm:$0xff] %v177_v32  ;;  %v67_v32 = vld [vmem:[%s829_s0 + $0x1a8] sm:$0xff]  ;;  %v134_v37 = vmul.f32 %v310_v1, %v66_v29 }
  0x23   :  { %242 = vst [vmem:[%s832_s3 + $0xe0] sm:$0xff] %v178_v35  ;;  %v68_v35 = vld [vmem:[%s829_s0 + $0x1b0] sm:$0xff]  ;;  %v135_v40 = vmul.f32 %v310_v1, %v67_v32 }
  0x24   :  { %243 = vst [vmem:[%s832_s3 + $0xe8] sm:$0xff] %v179_v38  ;;  %v69_v38 = vld [vmem:[%s829_s0 + $0x1b8] sm:$0xff]  ;;  %v136_v43 = vmul.f32 %v310_v1, %v68_v35  ;;  %v202_v48 = vadd.f32 %v315_v2, %v134_v37 }
  0x25   :  { %244 = vst [vmem:[%s832_s3 + $0xf0] sm:$0xff] %v180_v42  ;;  %v200_v42 = vadd.f32 %v315_v2, %v132_v31  ;;  %v137_v46 = vmul.f32 %v310_v1, %v69_v38  ;;  %v203_v51 = vadd.f32 %v315_v2, %v135_v40 }
  0x26   :  { %245 = vst [vmem:[%s832_s3 + $0xf8] sm:$0xff] %v181_v45  ;;  %v201_v45 = vadd.f32 %v315_v2, %v133_v34  ;;  %v204_v54 = vadd.f32 %v315_v2, %v136_v43 }
  0x27   :  { %246 = vst [vmem:[%s832_s3 + $0x100] sm:$0xff] %v182_v49  ;;  %v138_v49 = vmul.f32 %v310_v1, %v70_v41  ;;  %v205_v58 = vadd.f32 %v315_v2, %v137_v46 }
  0x28   :  { %247 = vst [vmem:[%s832_s3 + $0x108] sm:$0xff] %v183_v52  ;;  %v139_v52 = vmul.f32 %v310_v1, %v71_v44 }
  0x29   :  { %248 = vst [vmem:[%s832_s3 + $0x110] sm:$0xff] %v184_v56  ;;  %v140_v56 = vmul.f32 %v310_v1, %v72_v47  ;;  %v206_v61 = vadd.f32 %v315_v2, %v138_v49 }
  0x2a   :  { %249 = vst [vmem:[%s832_s3 + $0x118] sm:$0xff] %v185_v59  ;;  %v141_v59 = vmul.f32 %v310_v1, %v73_v50  ;;  %v207_v63 = vadd.f32 %v315_v2, %v139_v52 }
  0x2b   :  { %250 = vst [vmem:[%s832_s3 + $0x120] sm:$0xff] %v186_v62  ;;  %v142_v62 = vmul.f32 %v310_v1, %v74_v53  ;;  %v212_v1 = vadd.f32 %v315_v2, %v144_v4 }
  0x2c   :  { %251 = vst [vmem:[%s832_s3 + $0x128] sm:$0xff] %v187_v3  ;;  %v208_v3 = vadd.f32 %v315_v2, %v140_v56  ;;  %v209_v5 = vadd.f32 %v315_v2, %v141_v59 }
  0x2d   :  { %252 = vst [vmem:[%s832_s3 + $0x130] sm:$0xff] %v188_v6  ;;  %v210_v6 = vadd.f32 %v315_v2, %v142_v62 }
  0x2e   :  { %253 = vst [vmem:[%s832_s3 + $0x138] sm:$0xff] %v189_v9 }
  0x2f   :  { %254 = vst [vmem:[%s832_s3 + $0x140] sm:$0xff] %v190_v12 }
  0x30   :  { %255 = vst [vmem:[%s832_s3 + $0x148] sm:$0xff] %v191_v15 }
  0x31   :  { %256 = vst [vmem:[%s832_s3 + $0x150] sm:$0xff] %v192_v18 }
  0x32   :  { %257 = vst [vmem:[%s832_s3 + $0x158] sm:$0xff] %v193_v21 }
  0x33   :  { %258 = vst [vmem:[%s832_s3 + $0x160] sm:$0xff] %v194_v24 }
  0x34   :  { %259 = vst [vmem:[%s832_s3 + $0x168] sm:$0xff] %v195_v27 }
  0x35   :  { %260 = vst [vmem:[%s832_s3 + $0x170] sm:$0xff] %v196_v30 }
  0x36   :  { %261 = vst [vmem:[%s832_s3 + $0x178] sm:$0xff] %v197_v33 }
  0x37   :  { %262 = vst [vmem:[%s832_s3 + $0x180] sm:$0xff] %v198_v36 }
  0x38   :  { %263 = vst [vmem:[%s832_s3 + $0x188] sm:$0xff] %v199_v39 }
  0x39   :  { %264 = vst [vmem:[%s832_s3 + $0x190] sm:$0xff] %v200_v42 }
  0x3a   :  { %265 = vst [vmem:[%s832_s3 + $0x198] sm:$0xff] %v201_v45 }
  0x3b   :  { %266 = vst [vmem:[%s832_s3 + $0x1a0] sm:$0xff] %v202_v48 }
  0x3c   :  { %267 = vst [vmem:[%s832_s3 + $0x1a8] sm:$0xff] %v203_v51 }
  0x3d   :  { %268 = vst [vmem:[%s832_s3 + $0x1b0] sm:$0xff] %v204_v54 }
  0x3e   :  { %269 = vst [vmem:[%s832_s3 + $0x1b8] sm:$0xff] %v205_v58 }
  0x3f   :  { %270 = vst [vmem:[%s832_s3 + $0x1c0] sm:$0xff] %v206_v61 }
  0x40   :  { %271 = vst [vmem:[%s832_s3 + $0x1c8] sm:$0xff] %v207_v63 }
  0x41   :  { %272 = vst [vmem:[%s832_s3 + $0x1d0] sm:$0xff] %v208_v3 }
  0x42   :  { %273 = vst [vmem:[%s832_s3 + $0x1d8] sm:$0xff] %v209_v5 }
  0x43   :  { %274 = vst [vmem:[%s832_s3 + $0x1e0] sm:$0xff] %v210_v6 }
  0x44   :  { %275 = vst [vmem:[%s832_s3 + $0x1e8] sm:$0xff] %v211_v7 }
  0x45   :  { %276 = vst [vmem:[%s832_s3 + $0x1f0] sm:$0xff] %v212_v1 }
  0x46   :  { %277 = vst [vmem:[%s832_s3 + $0x1f8] sm:$0xff] %v604_v55 }

// kernel: van_conv_forward.4
= control target key start
LH: loop header
LB: loop body
LE: loop exit
PB: predicated region body
PF: predicated region fallthrough
CT: control target
= control target key end

     0   :  { %s1368_s1 = inlined_call_operand.vmem [shape: f32[128,128], index: 1, kind: input, shape index: {}]   ;;  %s1369_s0 = inlined_call_operand.vmem [shape: f32[512,128], index: 0, kind: input, shape index: {}]   ;;  %s1370_s2 = inlined_call_operand.vmem [shape: f32[512,128], index: 2, kind: output, shape index: {0}]   ;;  %s1371_s3 = inlined_call_operand.vmem [shape: f32[8,128], index: 3, kind: output, shape index: {1}]  }
   0x1   :  { %v92_v0 = vld [vmem:[%s1368_s1 + $0x78] sm:$0xff]  ;;  %v91_v1 = vld [vmem:[%s1368_s1 + $0x70] sm:$0xff]  ;;  %v90_v2 = vld [vmem:[%s1368_s1 + $0x68] sm:$0xff] }
   0x2   :  { %93 = vmatpush.msra.mxu0 %v92_v0  ;;  %583 = vmatpush.msra.mxu1 %v92_v0  ;;  %v89_v3 = vld [vmem:[%s1368_s1 + $0x60] sm:$0xff]  ;;  %v88_v4 = vld [vmem:[%s1368_s1 + $0x58] sm:$0xff]  ;;  %v87_v5 = vld [vmem:[%s1368_s1 + $0x50] sm:$0xff] }
   0x3   :  { %584 = vmatpush.msra.mxu2 %v92_v0  ;;  %585 = vmatpush.msra.mxu3 %v92_v0  ;;  %v86_v6 = vld [vmem:[%s1368_s1 + $0x48] sm:$0xff]  ;;  %v85_v7 = vld [vmem:[%s1368_s1 + $0x40] sm:$0xff]  ;;  %v84_v8 = vld [vmem:[%s1368_s1 + $0x38] sm:$0xff] }
   0x4   :  { %94 = vmatpush.msra.mxu0 %v91_v1  ;;  %586 = vmatpush.msra.mxu1 %v91_v1  ;;  %v83_v9 = vld [vmem:[%s1368_s1 + $0x30] sm:$0xff]  ;;  %v82_v10 = vld [vmem:[%s1368_s1 + $0x28] sm:$0xff]  ;;  %v81_v11 = vld [vmem:[%s1368_s1 + $0x20] sm:$0xff] }
   0x5   :  { %587 = vmatpush.msra.mxu2 %v91_v1  ;;  %588 = vmatpush.msra.mxu3 %v91_v1  ;;  %v80_v12 = vld [vmem:[%s1368_s1 + $0x18] sm:$0xff]  ;;  %v79_v13 = vld [vmem:[%s1368_s1 + $0x10] sm:$0xff]  ;;  %v78_v14 = vld [vmem:[%s1368_s1 + $0x8] sm:$0xff] }
   0x6   :  { %95 = vmatpush.msra.mxu0 %v90_v2  ;;  %589 = vmatpush.msra.mxu1 %v90_v2  ;;  %v77_v15 = vld [vmem:[%s1368_s1] sm:$0xff]  ;;  %v14_v18 = vld [vmem:[%s1369_s0 + $0x8] sm:$0xff]  ;;  %v15_v20 = vld [vmem:[%s1369_s0 + $0x10] sm:$0xff] }
   0x7   :  { %590 = vmatpush.msra.mxu2 %v90_v2  ;;  %591 = vmatpush.msra.mxu3 %v90_v2  ;;  %v13_v16 = vld [vmem:[%s1369_s0] sm:$0xff]  ;;  %v30_v19 = vld [vmem:[%s1369_s0 + $0x88] sm:$0xff]  ;;  %v31_v21 = vld [vmem:[%s1369_s0 + $0x90] sm:$0xff] }
   0x8   :  { %96 = vmatpush.msra.mxu0 %v89_v3  ;;  %592 = vmatpush.msra.mxu1 %v89_v3  ;;  %v29_v17 = vld [vmem:[%s1369_s0 + $0x80] sm:$0xff]  ;;  %v16_v22 = vld [vmem:[%s1369_s0 + $0x18] sm:$0xff]  ;;  %v46_v27 = vld [vmem:[%s1369_s0 + $0x108] sm:$0xff] }
   0x9   :  { %593 = vmatpush.msra.mxu2 %v89_v3  ;;  %594 = vmatpush.msra.mxu3 %v89_v3  ;;  %v32_v23 = vld [vmem:[%s1369_s0 + $0x98] sm:$0xff]  ;;  %v45_v24 = vld [vmem:[%s1369_s0 + $0x100] sm:$0xff]  ;;  %v18_v28 = vld [vmem:[%s1369_s0 + $0x28] sm:$0xff] }
   0xa   :  { %97 = vmatpush.msra.mxu0 %v88_v4  ;;  %595 = vmatpush.msra.mxu1 %v88_v4  ;;  %v17_v25 = vld [vmem:[%s1369_s0 + $0x20] sm:$0xff]  ;;  %v34_v29 = vld [vmem:[%s1369_s0 + $0xa8] sm:$0xff]  ;;  %v47_v30 = vld [vmem:[%s1369_s0 + $0x110] sm:$0xff] }
   0xb   :  { %596 = vmatpush.msra.mxu2 %v88_v4  ;;  %597 = vmatpush.msra.mxu3 %v88_v4  ;;  %v33_v26 = vld [vmem:[%s1369_s0 + $0xa0] sm:$0xff]  ;;  %v19_v31 = vld [vmem:[%s1369_s0 + $0x30] sm:$0xff]  ;;  %v48_v33 = vld [vmem:[%s1369_s0 + $0x118] sm:$0xff] }
   0xc   :  { %98 = vmatpush.msra.mxu0 %v87_v5  ;;  %598 = vmatpush.msra.mxu1 %v87_v5  ;;  %v35_v32 = vld [vmem:[%s1369_s0 + $0xb0] sm:$0xff]  ;;  %v20_v34 = vld [vmem:[%s1369_s0 + $0x38] sm:$0xff]  ;;  %v49_v36 = vld [vmem:[%s1369_s0 + $0x120] sm:$0xff] }
   0xd   :  { %599 = vmatpush.msra.mxu2 %v87_v5  ;;  %600 = vmatpush.msra.mxu3 %v87_v5  ;;  %v36_v35 = vld [vmem:[%s1369_s0 + $0xb8] sm:$0xff]  ;;  %v61_v37 = vld [vmem:[%s1369_s0 + $0x180] sm:$0xff]  ;;  %v50_v40 = vld [vmem:[%s1369_s0 + $0x128] sm:$0xff] }
   0xe   :  { %99 = vmatpush.msra.mxu0 %v86_v6  ;;  %601 = vmatpush.msra.mxu1 %v86_v6  ;;  %v21_v38 = vld [vmem:[%s1369_s0 + $0x40] sm:$0xff]  ;;  %v62_v41 = vld [vmem:[%s1369_s0 + $0x188] sm:$0xff]  ;;  %v51_v44 = vld [vmem:[%s1369_s0 + $0x130] sm:$0xff] }
   0xf   :  { %602 = vmatpush.msra.mxu2 %v86_v6  ;;  %603 = vmatpush.msra.mxu3 %v86_v6  ;;  %v37_v39 = vld [vmem:[%s1369_s0 + $0xc0] sm:$0xff]  ;;  %v22_v42 = vld [vmem:[%s1369_s0 + $0x48] sm:$0xff]  ;;  %v63_v45 = vld [vmem:[%s1369_s0 + $0x190] sm:$0xff] }
  0x10   :  { %100 = vmatpush.msra.mxu0 %v85_v7  ;;  %604 = vmatpush.msra.mxu1 %v85_v7  ;;  %v38_v43 = vld [vmem:[%s1369_s0 + $0xc8] sm:$0xff]  ;;  %v23_v46 = vld [vmem:[%s1369_s0 + $0x50] sm:$0xff]  ;;  %v52_v48 = vld [vmem:[%s1369_s0 + $0x138] sm:$0xff] }
  0x11   :  { %605 = vmatpush.msra.mxu2 %v85_v7  ;;  %606 = vmatpush.msra.mxu3 %v85_v7  ;;  %v39_v47 = vld [vmem:[%s1369_s0 + $0xd0] sm:$0xff]  ;;  %v64_v49 = vld [vmem:[%s1369_s0 + $0x198] sm:$0xff]  ;;  %v53_v52 = vld [vmem:[%s1369_s0 + $0x140] sm:$0xff] }
  0x12   :  { %101 = vmatpush.msra.mxu0 %v84_v8  ;;  %607 = vmatpush.msra.mxu1 %v84_v8  ;;  %v24_v50 = vld [vmem:[%s1369_s0 + $0x58] sm:$0xff]  ;;  %v65_v53 = vld [vmem:[%s1369_s0 + $0x1a0] sm:$0xff]  ;;  %v54_v56 = vld [vmem:[%s1369_s0 + $0x148] sm:$0xff] }
  0x13   :  { %608 = vmatpush.msra.mxu2 %v84_v8  ;;  %609 = vmatpush.msra.mxu3 %v84_v8  ;;  %v40_v51 = vld [vmem:[%s1369_s0 + $0xd8] sm:$0xff]  ;;  %v25_v54 = vld [vmem:[%s1369_s0 + $0x60] sm:$0xff]  ;;  %v66_v57 = vld [vmem:[%s1369_s0 + $0x1a8] sm:$0xff] }
  0x14   :  { %102 = vmatpush.msra.mxu0 %v83_v9  ;;  %610 = vmatpush.msra.mxu1 %v83_v9  ;;  %v41_v55 = vld [vmem:[%s1369_s0 + $0xe0] sm:$0xff]  ;;  %v26_v58 = vld [vmem:[%s1369_s0 + $0x68] sm:$0xff]  ;;  %v55_v60 = vld [vmem:[%s1369_s0 + $0x150] sm:$0xff] }
  0x15   :  { %611 = vmatpush.msra.mxu2 %v83_v9  ;;  %612 = vmatpush.msra.mxu3 %v83_v9  ;;  %v42_v59 = vld [vmem:[%s1369_s0 + $0xe8] sm:$0xff]  ;;  %v67_v61 = vld [vmem:[%s1369_s0 + $0x1b0] sm:$0xff]  ;;  %v56_v0 = vld [vmem:[%s1369_s0 + $0x158] sm:$0xff] }
  0x16   :  { %103 = vmatpush.msra.mxu0 %v82_v10  ;;  %613 = vmatpush.msra.mxu1 %v82_v10  ;;  %v27_v62 = vld [vmem:[%s1369_s0 + $0x70] sm:$0xff]  ;;  %v68_v1 = vld [vmem:[%s1369_s0 + $0x1b8] sm:$0xff]  ;;  %v57_v4 = vld [vmem:[%s1369_s0 + $0x160] sm:$0xff] }
  0x17   :  { %614 = vmatpush.msra.mxu2 %v82_v10  ;;  %615 = vmatpush.msra.mxu3 %v82_v10  ;;  %v43_v63 = vld [vmem:[%s1369_s0 + $0xf0] sm:$0xff]  ;;  %v28_v2 = vld [vmem:[%s1369_s0 + $0x78] sm:$0xff]  ;;  %v69_v5 = vld [vmem:[%s1369_s0 + $0x1c0] sm:$0xff] }
  0x18   :  { %104 = vmatpush.msra.mxu0 %v81_v11  ;;  %616 = vmatpush.msra.mxu1 %v81_v11  ;;  %v44_v3 = vld [vmem:[%s1369_s0 + $0xf8] sm:$0xff]  ;;  %v58_v8 = vld [vmem:[%s1369_s0 + $0x168] sm:$0xff] }
  0x19   :  { %617 = vmatpush.msra.mxu2 %v81_v11  ;;  %618 = vmatpush.msra.mxu3 %v81_v11  ;;  %v70_v9 = vld [vmem:[%s1369_s0 + $0x1c8] sm:$0xff] }
  0x1a   :  { %105 = vmatpush.msra.mxu0 %v80_v12  ;;  %619 = vmatpush.msra.mxu1 %v80_v12 }
  0x1b   :  { %620 = vmatpush.msra.mxu2 %v80_v12  ;;  %621 = vmatpush.msra.mxu3 %v80_v12 }
  0x1c   :  { %106 = vmatpush.msra.mxu0 %v79_v13  ;;  %622 = vmatpush.msra.mxu1 %v79_v13 }
  0x1d   :  { %623 = vmatpush.msra.mxu2 %v79_v13  ;;  %624 = vmatpush.msra.mxu3 %v79_v13 }
  0x1e   :  { %107 = vmatpush.msra.mxu0 %v78_v14  ;;  %625 = vmatpush.msra.mxu1 %v78_v14 }
  0x1f   :  { %626 = vmatpush.msra.mxu2 %v78_v14  ;;  %627 = vmatpush.msra.mxu3 %v78_v14 }
  0x20   :  { %108 = vmatpush.msra.mxu0 %v77_v15  ;;  %628 = vmatpush.msra.mxu1 %v77_v15 }
  0x21   :  { %109 = vmatmul.f32.vlgmr.msra.gmra.mxu0 %v13_v16  ;;  %157 = vmatmul.f32.vlgmr.msra.gmra.mxu1 %v29_v17  ;;  %v59_v16 = vld [vmem:[%s1369_s0 + $0x170] sm:$0xff] }
  0x22   :  { %629 = vmatpush.msra.mxu2 %v77_v15  ;;  %630 = vmatpush.msra.mxu3 %v77_v15  ;;  %v71_v17 = vld [vmem:[%s1369_s0 + $0x1d0] sm:$0xff] }
  0x23   :  { %205 = vmatmul.f32.vlgmr.msra.gmra.mxu2 %v45_v24  ;;  %253 = vmatmul.f32.vlgmr.msra.gmra.mxu3 %v61_v37  ;;  %v72_v24 = vld [vmem:[%s1369_s0 + $0x1d8] sm:$0xff]  ;;  %v74_v37 = vld [vmem:[%s1369_s0 + $0x1e8] sm:$0xff] }
  0x29   :  { %112 = vmatmul.f32.gmra.mxu0 %v14_v18  ;;  %160 = vmatmul.f32.gmra.mxu1 %v30_v19 }
  0x2b   :  { %208 = vmatmul.f32.gmra.mxu2 %v46_v27  ;;  %256 = vmatmul.f32.gmra.mxu3 %v62_v41  ;;  %v75_v41 = vld [vmem:[%s1369_s0 + $0x1f0] sm:$0xff] }
  0x31   :  { %115 = vmatmul.f32.gmra.mxu0 %v15_v20  ;;  %163 = vmatmul.f32.gmra.mxu1 %v31_v21 }
  0x33   :  { %211 = vmatmul.f32.gmra.mxu2 %v47_v30  ;;  %259 = vmatmul.f32.gmra.mxu3 %v63_v45  ;;  %v73_v30 = vld [vmem:[%s1369_s0 + $0x1e0] sm:$0xff]  ;;  %v76_v45 = vld [vmem:[%s1369_s0 + $0x1f8] sm:$0xff] }
  0x39   :  { %118 = vmatmul.f32.gmra.mxu0 %v16_v22  ;;  %166 = vmatmul.f32.gmra.mxu1 %v32_v23  ;;  %v60_v23 = vld [vmem:[%s1369_s0 + $0x178] sm:$0xff] }
  0x3b   :  { %214 = vmatmul.f32.gmra.mxu2 %v48_v33  ;;  %262 = vmatmul.f32.gmra.mxu3 %v64_v49 }
  0x41   :  { %121 = vmatmul.f32.gmra.mxu0 %v17_v25  ;;  %169 = vmatmul.f32.gmra.mxu1 %v33_v26 }
  0x43   :  { %217 = vmatmul.f32.gmra.mxu2 %v49_v36  ;;  %265 = vmatmul.f32.gmra.mxu3 %v65_v53 }
  0x49   :  { %124 = vmatmul.f32.gmra.mxu0 %v18_v28  ;;  %172 = vmatmul.f32.gmra.mxu1 %v34_v29 }
  0x4b   :  { %220 = vmatmul.f32.gmra.mxu2 %v50_v40  ;;  %268 = vmatmul.f32.gmra.mxu3 %v66_v57 }
  0x51   :  { %127 = vmatmul.f32.gmra.mxu0 %v19_v31  ;;  %175 = vmatmul.f32.gmra.mxu1 %v35_v32 }
  0x53   :  { %223 = vmatmul.f32.gmra.mxu2 %v51_v44  ;;  %271 = vmatmul.f32.gmra.mxu3 %v67_v61 }
  0x59   :  { %130 = vmatmul.f32.gmra.mxu0 %v20_v34  ;;  %178 = vmatmul.f32.gmra.mxu1 %v36_v35 }
  0x5b   :  { %226 = vmatmul.f32.gmra.mxu2 %v52_v48  ;;  %274 = vmatmul.f32.gmra.mxu3 %v68_v1 }
  0x61   :  { %133 = vmatmul.f32.gmra.mxu0 %v21_v38  ;;  %181 = vmatmul.f32.gmra.mxu1 %v37_v39 }
  0x63   :  { %229 = vmatmul.f32.gmra.mxu2 %v53_v52  ;;  %277 = vmatmul.f32.gmra.mxu3 %v69_v5 }
  0x69   :  { %136 = vmatmul.f32.gmra.mxu0 %v22_v42  ;;  %184 = vmatmul.f32.gmra.mxu1 %v38_v43 }
  0x6b   :  { %232 = vmatmul.f32.gmra.mxu2 %v54_v56  ;;  %280 = vmatmul.f32.gmra.mxu3 %v70_v9 }
  0x71   :  { %139 = vmatmul.f32.gmra.mxu0 %v23_v46  ;;  %187 = vmatmul.f32.gmra.mxu1 %v39_v47 }
  0x73   :  { %235 = vmatmul.f32.gmra.mxu2 %v55_v60  ;;  %283 = vmatmul.f32.gmra.mxu3 %v71_v17 }
  0x79   :  { %142 = vmatmul.f32.gmra.mxu0 %v24_v50  ;;  %190 = vmatmul.f32.gmra.mxu1 %v40_v51 }
  0x7b   :  { %238 = vmatmul.f32.gmra.mxu2 %v56_v0  ;;  %286 = vmatmul.f32.gmra.mxu3 %v72_v24 }
  0x81   :  { %145 = vmatmul.f32.gmra.mxu0 %v25_v54  ;;  %193 = vmatmul.f32.gmra.mxu1 %v41_v55 }
  0x83   :  { %241 = vmatmul.f32.gmra.mxu2 %v57_v4  ;;  %289 = vmatmul.f32.gmra.mxu3 %v73_v30 }
  0x89   :  { %148 = vmatmul.f32.gmra.mxu0 %v26_v58  ;;  %196 = vmatmul.f32.gmra.mxu1 %v42_v59 }
  0x8b   :  { %244 = vmatmul.f32.gmra.mxu2 %v58_v8  ;;  %292 = vmatmul.f32.gmra.mxu3 %v74_v37 }
  0x91   :  { %151 = vmatmul.f32.gmra.mxu0 %v27_v62  ;;  %199 = vmatmul.f32.gmra.mxu1 %v43_v63 }
  0x93   :  { %247 = vmatmul.f32.gmra.mxu2 %v59_v16  ;;  %295 = vmatmul.f32.gmra.mxu3 %v75_v41 }
  0x99   :  { %154 = vmatmul.f32.gmra.mxu0 %v28_v2  ;;  %202 = vmatmul.f32.gmra.mxu1 %v44_v3 }
  0x9b   :  { %250 = vmatmul.f32.gmra.mxu2 %v60_v23  ;;  %298 = vmatmul.f32.gmra.mxu3 %v76_v45 }
  0x9e   :  { %v110_v6 = vpop.f32.mrf.mxu0  ;;  %v861_v7 = vpop.f32.mrf.mxu1 }
  0x9f   :  { %302 = vst [vmem:[%s1370_s2] sm:$0xff] %v110_v6  ;;  %v435_v12 = vmul.f32 %v110_v6, %v110_v6 }
  0xa0   :  { %318 = vst [vmem:[%s1370_s2 + $0x80] sm:$0xff] %v861_v7 }
  0xa6   :  { %v113_v10 = vpop.f32.mrf.mxu0  ;;  %v876_v11 = vpop.f32.mrf.mxu1 }
  0xa7   :  { %303 = vst [vmem:[%s1370_s2 + $0x8] sm:$0xff] %v113_v10  ;;  %v366_v13 = vadd.f32 %v113_v10, %v110_v6  ;;  %v436_v14 = vmul.f32 %v113_v10, %v113_v10  ;;  %v925_v35 = vpop.f32.mrf.mxu2  ;;  %v1001_v52 = vpop.f32.mrf.mxu3 }
  0xa8   :  { %319 = vst [vmem:[%s1370_s2 + $0x88] sm:$0xff] %v876_v11 }
  0xa9   :  { %v499_v15 = vadd.f32 %v436_v14, %v435_v12  ;;  %334 = vst [vmem:[%s1370_s2 + $0x100] sm:$0xff] %v925_v35 }
  0xaa   :  { %350 = vst [vmem:[%s1370_s2 + $0x180] sm:$0xff] %v1001_v52 }
  0xae   :  { %v116_v18 = vpop.f32.mrf.mxu0  ;;  %v891_v19 = vpop.f32.mrf.mxu1 }
  0xaf   :  { %304 = vst [vmem:[%s1370_s2 + $0x10] sm:$0xff] %v116_v18  ;;  %v367_v20 = vadd.f32 %v366_v13, %v116_v18  ;;  %v437_v21 = vmul.f32 %v116_v18, %v116_v18  ;;  %v948_v40 = vpop.f32.mrf.mxu2  ;;  %v1022_v56 = vpop.f32.mrf.mxu3 }
  0xb0   :  { %320 = vst [vmem:[%s1370_s2 + $0x90] sm:$0xff] %v891_v19 }
  0xb1   :  { %v500_v22 = vadd.f32 %v499_v15, %v437_v21  ;;  %335 = vst [vmem:[%s1370_s2 + $0x108] sm:$0xff] %v948_v40 }
  0xb2   :  { %351 = vst [vmem:[%s1370_s2 + $0x188] sm:$0xff] %v1022_v56 }
  0xb6   :  { %v119_v25 = vpop.f32.mrf.mxu0  ;;  %v906_v26 = vpop.f32.mrf.mxu1 }
  0xb7   :  { %305 = vst [vmem:[%s1370_s2 + $0x18] sm:$0xff] %v119_v25  ;;  %v368_v27 = vadd.f32 %v367_v20, %v119_v25  ;;  %v438_v28 = vmul.f32 %v119_v25, %v119_v25  ;;  %v966_v44 = vpop.f32.mrf.mxu2  ;;  %v1043_v60 = vpop.f32.mrf.mxu3 }
  0xb8   :  { %321 = vst [vmem:[%s1370_s2 + $0x98] sm:$0xff] %v906_v26 }
  0xb9   :  { %v501_v29 = vadd.f32 %v500_v22, %v438_v28  ;;  %336 = vst [vmem:[%s1370_s2 + $0x110] sm:$0xff] %v966_v44 }
  0xba   :  { %352 = vst [vmem:[%s1370_s2 + $0x190] sm:$0xff] %v1043_v60 }
  0xbe   :  { %v122_v31 = vpop.f32.mrf.mxu0  ;;  %v918_v32 = vpop.f32.mrf.mxu1 }
  0xbf   :  { %306 = vst [vmem:[%s1370_s2 + $0x20] sm:$0xff] %v122_v31  ;;  %v923_v33 = vadd.f32 %v368_v27, %v122_v31  ;;  %v439_v34 = vmul.f32 %v122_v31, %v122_v31  ;;  %v984_v48 = vpop.f32.mrf.mxu2  ;;  %v1064_v0 = vpop.f32.mrf.mxu3 }
  0xc0   :  { %322 = vst [vmem:[%s1370_s2 + $0xa0] sm:$0xff] %v918_v32 }
  0xc1   :  { %v931_v36 = vadd.f32 %v501_v29, %v439_v34  ;;  %337 = vst [vmem:[%s1370_s2 + $0x118] sm:$0xff] %v984_v48 }
  0xc2   :  { %353 = vst [vmem:[%s1370_s2 + $0x198] sm:$0xff] %v1064_v0 }
  0xc6   :  { %v940_v38 = vpop.f32.mrf.mxu0  ;;  %v942_v39 = vpop.f32.mrf.mxu1 }
  0xc7   :  { %307 = vst [vmem:[%s1370_s2 + $0x28] sm:$0xff] %v940_v38  ;;  %v999_v51 = vpop.f32.mrf.mxu2  ;;  %v1085_v4 = vpop.f32.mrf.mxu3  ;;  %v440_v5 = vmul.f32 %v940_v38, %v940_v38  ;;  %v370_v6 = vadd.f32 %v923_v33, %v940_v38 }
  0xc8   :  { %323 = vst [vmem:[%s1370_s2 + $0xa8] sm:$0xff] %v942_v39 }
  0xc9   :  { %338 = vst [vmem:[%s1370_s2 + $0x120] sm:$0xff] %v999_v51  ;;  %v503_v9 = vadd.f32 %v931_v36, %v440_v5 }
  0xca   :  { %354 = vst [vmem:[%s1370_s2 + $0x1a0] sm:$0xff] %v1085_v4 }
  0xce   :  { %v128_v42 = vpop.f32.mrf.mxu0  ;;  %v961_v43 = vpop.f32.mrf.mxu1 }
  0xcf   :  { %308 = vst [vmem:[%s1370_s2 + $0x30] sm:$0xff] %v128_v42  ;;  %v1020_v55 = vpop.f32.mrf.mxu2  ;;  %v441_v8 = vmul.f32 %v128_v42, %v128_v42  ;;  %v371_v10 = vadd.f32 %v370_v6, %v128_v42  ;;  %v1111_v20 = vpop.f32.mrf.mxu3 }
  0xd0   :  { %324 = vst [vmem:[%s1370_s2 + $0xb0] sm:$0xff] %v961_v43 }
  0xd1   :  { %339 = vst [vmem:[%s1370_s2 + $0x128] sm:$0xff] %v1020_v55  ;;  %v504_v15 = vadd.f32 %v503_v9, %v441_v8 }
  0xd2   :  { %355 = vst [vmem:[%s1370_s2 + $0x1a8] sm:$0xff] %v1111_v20 }
  0xd6   :  { %v131_v46 = vpop.f32.mrf.mxu0  ;;  %v979_v47 = vpop.f32.mrf.mxu1 }
  0xd7   :  { %309 = vst [vmem:[%s1370_s2 + $0x38] sm:$0xff] %v131_v46  ;;  %v1041_v59 = vpop.f32.mrf.mxu2  ;;  %v442_v12 = vmul.f32 %v131_v46, %v131_v46  ;;  %v372_v16 = vadd.f32 %v371_v10, %v131_v46  ;;  %v1132_v41 = vpop.f32.mrf.mxu3 }
  0xd8   :  { %325 = vst [vmem:[%s1370_s2 + $0xb8] sm:$0xff] %v979_v47 }
  0xd9   :  { %340 = vst [vmem:[%s1370_s2 + $0x130] sm:$0xff] %v1041_v59  ;;  %v505_v21 = vadd.f32 %v504_v15, %v442_v12 }
  0xda   :  { %356 = vst [vmem:[%s1370_s2 + $0x1b0] sm:$0xff] %v1132_v41 }
  0xde   :  { %v134_v49 = vpop.f32.mrf.mxu0  ;;  %v994_v50 = vpop.f32.mrf.mxu1 }
  0xdf   :  { %310 = vst [vmem:[%s1370_s2 + $0x40] sm:$0xff] %v134_v49  ;;  %v1062_v63 = vpop.f32.mrf.mxu2  ;;  %v443_v17 = vmul.f32 %v134_v49, %v134_v49  ;;  %v373_v22 = vadd.f32 %v372_v16, %v134_v49  ;;  %v1153_v15 = vpop.f32.mrf.mxu3 }
  0xe0   :  { %326 = vst [vmem:[%s1370_s2 + $0xc0] sm:$0xff] %v994_v50 }
  0xe1   :  { %341 = vst [vmem:[%s1370_s2 + $0x138] sm:$0xff] %v1062_v63  ;;  %v506_v24 = vadd.f32 %v505_v21, %v443_v17  ;;  %v452_v21 = vmul.f32 %v876_v11, %v876_v11 }
  0xe2   :  { %357 = vst [vmem:[%s1370_s2 + $0x1b8] sm:$0xff] %v1153_v15 }
  0xe6   :  { %v137_v53 = vpop.f32.mrf.mxu0  ;;  %v1015_v54 = vpop.f32.mrf.mxu1 }
  0xe7   :  { %311 = vst [vmem:[%s1370_s2 + $0x48] sm:$0xff] %v137_v53  ;;  %v1083_v3 = vpop.f32.mrf.mxu2  ;;  %v444_v23 = vmul.f32 %v137_v53, %v137_v53  ;;  %v374_v25 = vadd.f32 %v373_v22, %v137_v53 }
  0xe8   :  { %327 = vst [vmem:[%s1370_s2 + $0xc8] sm:$0xff] %v1015_v54 }
  0xe9   :  { %342 = vst [vmem:[%s1370_s2 + $0x140] sm:$0xff] %v1083_v3  ;;  %v507_v28 = vadd.f32 %v506_v24, %v444_v23 }
  0xee   :  { %v140_v57 = vpop.f32.mrf.mxu0  ;;  %v1036_v58 = vpop.f32.mrf.mxu1 }
  0xef   :  { %312 = vst [vmem:[%s1370_s2 + $0x50] sm:$0xff] %v140_v57  ;;  %v1109_v18 = vpop.f32.mrf.mxu2  ;;  %v445_v27 = vmul.f32 %v140_v57, %v140_v57  ;;  %v375_v29 = vadd.f32 %v374_v25, %v140_v57 }
  0xf0   :  { %328 = vst [vmem:[%s1370_s2 + $0xd0] sm:$0xff] %v1036_v58 }
  0xf1   :  { %343 = vst [vmem:[%s1370_s2 + $0x148] sm:$0xff] %v1109_v18  ;;  %v508_v34 = vadd.f32 %v507_v28, %v445_v27  ;;  %v454_v27 = vmul.f32 %v906_v26, %v906_v26 }
  0xf6   :  { %v143_v61 = vpop.f32.mrf.mxu0  ;;  %v1057_v62 = vpop.f32.mrf.mxu1 }
  0xf7   :  { %313 = vst [vmem:[%s1370_s2 + $0x58] sm:$0xff] %v143_v61  ;;  %v446_v30 = vmul.f32 %v143_v61, %v143_v61  ;;  %v376_v36 = vadd.f32 %v375_v29, %v143_v61  ;;  %v1130_v38 = vpop.f32.mrf.mxu2 }
  0xf8   :  { %329 = vst [vmem:[%s1370_s2 + $0xd8] sm:$0xff] %v1057_v62 }
  0xf9   :  { %v509_v42 = vadd.f32 %v508_v34, %v446_v30  ;;  %344 = vst [vmem:[%s1370_s2 + $0x150] sm:$0xff] %v1130_v38 }
  0xfe   :  { %v146_v1 = vpop.f32.mrf.mxu0  ;;  %v1078_v2 = vpop.f32.mrf.mxu1 }
  0xff   :  { %314 = vst [vmem:[%s1370_s2 + $0x60] sm:$0xff] %v146_v1  ;;  %v447_v37 = vmul.f32 %v146_v1, %v146_v1  ;;  %v377_v45 = vadd.f32 %v376_v36, %v146_v1  ;;  %v1151_v12 = vpop.f32.mrf.mxu2 }
 0x100   :  { %330 = vst [vmem:[%s1370_s2 + $0xe0] sm:$0xff] %v1078_v2 }
 0x101   :  { %v510_v49 = vadd.f32 %v509_v42, %v447_v37  ;;  %345 = vst [vmem:[%s1370_s2 + $0x158] sm:$0xff] %v1151_v12  ;;  %v457_v42 = vmul.f32 %v961_v43, %v961_v43 }
 0x106   :  { %v149_v13 = vpop.f32.mrf.mxu0  ;;  %v1104_v14 = vpop.f32.mrf.mxu1 }
 0x107   :  { %315 = vst [vmem:[%s1370_s2 + $0x68] sm:$0xff] %v149_v13  ;;  %v448_v46 = vmul.f32 %v149_v13, %v149_v13  ;;  %v378_v53 = vadd.f32 %v377_v45, %v149_v13  ;;  %v451_v13 = vmul.f32 %v861_v7, %v861_v7  ;;  %v1179_v30 = vpop.f32.mrf.mxu2 }
 0x108   :  { %331 = vst [vmem:[%s1370_s2 + $0xe8] sm:$0xff] %v1104_v14 }
 0x109   :  { %v511_v61 = vadd.f32 %v510_v49, %v448_v46  ;;  %346 = vst [vmem:[%s1370_s2 + $0x160] sm:$0xff] %v1179_v30 }
 0x10e   :  { %v152_v31 = vpop.f32.mrf.mxu0  ;;  %v1125_v33 = vpop.f32.mrf.mxu1 }
 0x10f   :  { %316 = vst [vmem:[%s1370_s2 + $0x70] sm:$0xff] %v152_v31  ;;  %v449_v57 = vmul.f32 %v152_v31, %v152_v31  ;;  %v379_v5 = vadd.f32 %v378_v53, %v152_v31  ;;  %v1181_v31 = vpop.f32.mrf.mxu3 }
 0x110   :  { %332 = vst [vmem:[%s1370_s2 + $0xf0] sm:$0xff] %v1125_v33 }
 0x111   :  { %v512_v1 = vadd.f32 %v511_v61, %v449_v57  ;;  %358 = vst [vmem:[%s1370_s2 + $0x1c0] sm:$0xff] %v1181_v31  ;;  %v1203_v57 = vpop.f32.mrf.mxu2 }
 0x112   :  { %347 = vst [vmem:[%s1370_s2 + $0x168] sm:$0xff] %v1203_v57 }
 0x116   :  { %v155_v6 = vpop.f32.mrf.mxu0  ;;  %v1146_v8 = vpop.f32.mrf.mxu1 }
 0x117   :  { %317 = vst [vmem:[%s1370_s2 + $0x78] sm:$0xff] %v155_v6  ;;  %v380_v9 = vadd.f32 %v379_v5, %v155_v6  ;;  %v450_v10 = vmul.f32 %v155_v6, %v155_v6  ;;  %v1205_v61 = vpop.f32.mrf.mxu3 }
 0x118   :  { %333 = vst [vmem:[%s1370_s2 + $0xf8] sm:$0xff] %v1146_v8 }
 0x119   :  { %v381_v16 = vadd.f32 %v380_v9, %v861_v7  ;;  %v513_v17 = vadd.f32 %v512_v1, %v450_v10  ;;  %v453_v7 = vmul.f32 %v891_v19, %v891_v19  ;;  %359 = vst [vmem:[%s1370_s2 + $0x1c8] sm:$0xff] %v1205_v61  ;;  %v461_v9 = vmul.f32 %v1036_v58, %v1036_v58 }
 0x11b   :  { %v382_v22 = vadd.f32 %v381_v16, %v876_v11  ;;  %v514_v23 = vadd.f32 %v513_v17, %v451_v13  ;;  %v455_v11 = vmul.f32 %v918_v32, %v918_v32  ;;  %v462_v16 = vmul.f32 %v1057_v62, %v1057_v62 }
 0x11d   :  { %v383_v24 = vadd.f32 %v382_v22, %v891_v19  ;;  %v515_v25 = vadd.f32 %v514_v23, %v452_v21  ;;  %v1227_v21 = vpop.f32.mrf.mxu2 }
 0x11e   :  { %348 = vst [vmem:[%s1370_s2 + $0x170] sm:$0xff] %v1227_v21 }
 0x11f   :  { %v384_v28 = vadd.f32 %v383_v24, %v906_v26  ;;  %v516_v29 = vadd.f32 %v515_v25, %v453_v7  ;;  %v456_v26 = vmul.f32 %v942_v39, %v942_v39  ;;  %v1229_v22 = vpop.f32.mrf.mxu3  ;;  %v464_v24 = vmul.f32 %v1104_v14, %v1104_v14 }
 0x120   :  { %360 = vst [vmem:[%s1370_s2 + $0x1d0] sm:$0xff] %v1229_v22 }
 0x121   :  { %v385_v19 = vadd.f32 %v384_v28, %v918_v32  ;;  %v517_v34 = vadd.f32 %v516_v29, %v454_v27  ;;  %v458_v32 = vmul.f32 %v979_v47, %v979_v47  ;;  %v465_v28 = vmul.f32 %v1125_v33, %v1125_v33 }
 0x123   :  { %v386_v36 = vadd.f32 %v385_v19, %v942_v39  ;;  %v518_v37 = vadd.f32 %v517_v34, %v455_v11  ;;  %v459_v39 = vmul.f32 %v994_v50, %v994_v50 }
 0x125   :  { %v519_v45 = vadd.f32 %v518_v37, %v456_v26  ;;  %v387_v46 = vadd.f32 %v386_v36, %v961_v43  ;;  %v251_v19 = vpop.f32.mrf.mxu2 }
 0x126   :  { %349 = vst [vmem:[%s1370_s2 + $0x178] sm:$0xff] %v251_v19 }
 0x127   :  { %v388_v49 = vadd.f32 %v387_v46, %v979_v47  ;;  %v520_v53 = vadd.f32 %v519_v45, %v457_v42  ;;  %v460_v47 = vmul.f32 %v1015_v54, %v1015_v54  ;;  %v1251_v34 = vpop.f32.mrf.mxu3  ;;  %v469_v42 = vmul.f32 %v966_v44, %v966_v44 }
 0x128   :  { %361 = vst [vmem:[%s1370_s2 + $0x1d8] sm:$0xff] %v1251_v34 }
 0x129   :  { %v389_v43 = vadd.f32 %v388_v49, %v994_v50  ;;  %v521_v5 = vadd.f32 %v520_v53, %v458_v32 }
 0x12b   :  { %v390_v6 = vadd.f32 %v389_v43, %v1015_v54  ;;  %v522_v1 = vadd.f32 %v521_v5, %v459_v39  ;;  %v472_v43 = vmul.f32 %v1020_v55, %v1020_v55 }
 0x12d   :  { %v391_v10 = vadd.f32 %v390_v6, %v1036_v58  ;;  %v523_v13 = vadd.f32 %v522_v1, %v460_v47  ;;  %v463_v58 = vmul.f32 %v1078_v2, %v1078_v2  ;;  %v473_v47 = vmul.f32 %v1041_v59, %v1041_v59 }
 0x12f   :  { %v392_v50 = vadd.f32 %v391_v10, %v1057_v62  ;;  %v524_v17 = vadd.f32 %v523_v13, %v461_v9  ;;  %v1272_v53 = vpop.f32.mrf.mxu3  ;;  %v474_v9 = vmul.f32 %v1062_v63, %v1062_v63 }
 0x130   :  { %362 = vst [vmem:[%s1370_s2 + $0x1e0] sm:$0xff] %v1272_v53 }
 0x131   :  { %v525_v54 = vadd.f32 %v524_v17, %v462_v16  ;;  %v393_v23 = vadd.f32 %v392_v50, %v1078_v2  ;;  %v466_v2 = vmul.f32 %v1146_v8, %v1146_v8 }
 0x133   :  { %v526_v62 = vadd.f32 %v525_v54, %v463_v58  ;;  %v394_v7 = vadd.f32 %v393_v23, %v1104_v14  ;;  %v467_v14 = vmul.f32 %v925_v35, %v925_v35  ;;  %v477_v54 = vmul.f32 %v1130_v38, %v1130_v38 }
 0x135   :  { %v527_v25 = vadd.f32 %v526_v62, %v464_v24  ;;  %v395_v27 = vadd.f32 %v394_v7, %v1125_v33  ;;  %v468_v33 = vmul.f32 %v948_v40, %v948_v40  ;;  %v478_v7 = vmul.f32 %v1151_v12, %v1151_v12 }
 0x137   :  { %v528_v29 = vadd.f32 %v527_v25, %v465_v28  ;;  %v396_v11 = vadd.f32 %v395_v27, %v1146_v8  ;;  %v479_v27 = vmul.f32 %v1179_v30, %v1179_v30 }
 0x139   :  { %v397_v26 = vadd.f32 %v396_v11, %v925_v35  ;;  %v529_v36 = vadd.f32 %v528_v29, %v466_v2  ;;  %v470_v35 = vmul.f32 %v984_v48, %v984_v48  ;;  %v480_v2 = vmul.f32 %v1203_v57, %v1203_v57 }
 0x13a   :  { %v481_v11 = vmul.f32 %v1227_v21, %v1227_v21 }
 0x13b   :  { %v398_v8 = vadd.f32 %v397_v26, %v948_v40  ;;  %v530_v37 = vadd.f32 %v529_v36, %v467_v14  ;;  %v471_v40 = vmul.f32 %v999_v51, %v999_v51  ;;  %v482_v14 = vmul.f32 %v251_v19, %v251_v19 }
 0x13d   :  { %v399_v45 = vadd.f32 %v398_v8, %v966_v44  ;;  %v531_v46 = vadd.f32 %v530_v37, %v468_v33  ;;  %v484_v37 = vmul.f32 %v1022_v56, %v1022_v56 }
 0x13f   :  { %v400_v32 = vadd.f32 %v399_v45, %v984_v48  ;;  %v532_v49 = vadd.f32 %v531_v46, %v469_v42 }
 0x141   :  { %v401_v39 = vadd.f32 %v400_v32, %v999_v51  ;;  %v533_v44 = vadd.f32 %v532_v49, %v470_v35  ;;  %v1290_v51 = vpop.f32.mrf.mxu3  ;;  %v486_v35 = vmul.f32 %v1064_v0, %v1064_v0 }
 0x142   :  { %363 = vst [vmem:[%s1370_s2 + $0x1e8] sm:$0xff] %v1290_v51 }
 0x143   :  { %v402_v5 = vadd.f32 %v401_v39, %v1020_v55  ;;  %v534_v48 = vadd.f32 %v533_v44, %v471_v40  ;;  %v475_v55 = vmul.f32 %v1083_v3, %v1083_v3 }
 0x145   :  { %v535_v6 = vadd.f32 %v534_v48, %v472_v43  ;;  %v403_v1 = vadd.f32 %v402_v5, %v1041_v59  ;;  %v476_v59 = vmul.f32 %v1109_v18, %v1109_v18 }
 0x147   :  { %v404_v10 = vadd.f32 %v403_v1, %v1062_v63  ;;  %v536_v13 = vadd.f32 %v535_v6, %v473_v47 }
 0x149   :  { %v405_v50 = vadd.f32 %v404_v10, %v1083_v3  ;;  %v537_v16 = vadd.f32 %v536_v13, %v474_v9  ;;  %v296_v3 = vpop.f32.mrf.mxu3 }
 0x14a   :  { %364 = vst [vmem:[%s1370_s2 + $0x1f0] sm:$0xff] %v296_v3 }
 0x14b   :  { %v406_v17 = vadd.f32 %v405_v50, %v1109_v18  ;;  %v538_v63 = vadd.f32 %v537_v16, %v475_v55  ;;  %v494_v16 = vmul.f32 %v1251_v34, %v1251_v34 }
 0x14d   :  { %v407_v23 = vadd.f32 %v406_v17, %v1130_v38  ;;  %v539_v58 = vadd.f32 %v538_v63, %v476_v59  ;;  %v495_v63 = vmul.f32 %v1272_v53, %v1272_v53 }
 0x14f   :  { %v408_v62 = vadd.f32 %v407_v23, %v1151_v12  ;;  %v540_v24 = vadd.f32 %v539_v58, %v477_v54  ;;  %v496_v23 = vmul.f32 %v1290_v51, %v1290_v51 }
 0x151   :  { %v541_v25 = vadd.f32 %v540_v24, %v478_v7  ;;  %v409_v18 = vadd.f32 %v408_v62, %v1179_v30  ;;  %v299_v33 = vpop.f32.mrf.mxu3  ;;  %v483_v30 = vmul.f32 %v1001_v52, %v1001_v52  ;;  %v497_v62 = vmul.f32 %v296_v3, %v296_v3 }
 0x152   :  { %365 = vst [vmem:[%s1370_s2 + $0x1f8] sm:$0xff] %v299_v33  ;;  %v498_v7 = vmul.f32 %v299_v33, %v299_v33 }
 0x153   :  { %v542_v28 = vadd.f32 %v541_v25, %v479_v27  ;;  %v410_v38 = vadd.f32 %v409_v18, %v1203_v57 }
 0x155   :  { %v543_v29 = vadd.f32 %v542_v28, %v480_v2  ;;  %v411_v12 = vadd.f32 %v410_v38, %v1227_v21  ;;  %v568_v38 = vlaneseq }
 0x157   :  { %v544_v26 = vadd.f32 %v543_v29, %v481_v11  ;;  %v412_v36 = vadd.f32 %v411_v12, %v251_v19  ;;  %v485_v19 = vmul.f32 %v1043_v60, %v1043_v60  ;;  %v569_v11 = vshrl.u32 %v568_v38, 7 }
 0x159   :  { %v413_v8 = vadd.f32 %v412_v36, %v1001_v52  ;;  %v545_v57 = vadd.f32 %v544_v26, %v482_v14  ;;  %v487_v52 = vmul.f32 %v1085_v4, %v1085_v4  ;;  %vm571_vm0 = vcmp.eq.s32.totalorder %v569_v11, 1 }
 0x15a   :  { %vm570_vm1 = vcmp.eq.s32.totalorder %v569_v11, 0 }
 0x15b   :  { %v414_v42 = vadd.f32 %v413_v8, %v1022_v56  ;;  %v546_v21 = vadd.f32 %v545_v57, %v483_v30  ;;  %v488_v56 = vmul.f32 %v1111_v20, %v1111_v20 }
 0x15d   :  { %v415_v45 = vadd.f32 %v414_v42, %v1043_v60  ;;  %v547_v46 = vadd.f32 %v546_v21, %v484_v37  ;;  %v489_v60 = vmul.f32 %v1132_v41, %v1132_v41 }
 0x15f   :  { %v416_v32 = vadd.f32 %v415_v45, %v1064_v0  ;;  %v548_v49 = vadd.f32 %v547_v46, %v485_v19  ;;  %v490_v0 = vmul.f32 %v1153_v15, %v1153_v15 }
 0x161   :  { %v417_v40 = vadd.f32 %v416_v32, %v1085_v4  ;;  %v549_v39 = vadd.f32 %v548_v49, %v486_v35  ;;  %v491_v4 = vmul.f32 %v1181_v31, %v1181_v31 }
 0x163   :  { %v418_v44 = vadd.f32 %v417_v40, %v1111_v20  ;;  %v550_v43 = vadd.f32 %v549_v39, %v487_v52  ;;  %v492_v20 = vmul.f32 %v1205_v61, %v1205_v61 }
 0x165   :  { %v551_v5 = vadd.f32 %v550_v43, %v488_v56  ;;  %v419_v48 = vadd.f32 %v418_v44, %v1132_v41  ;;  %v493_v41 = vmul.f32 %v1229_v22, %v1229_v22 }
 0x167   :  { %v420_v47 = vadd.f32 %v419_v48, %v1153_v15  ;;  %v552_v6 = vadd.f32 %v551_v5, %v489_v60 }
 0x169   :  { %v421_v1 = vadd.f32 %v420_v47, %v1181_v31  ;;  %v553_v9 = vadd.f32 %v552_v6, %v490_v0 }
 0x16b   :  { %v422_v10 = vadd.f32 %v421_v1, %v1205_v61  ;;  %v554_v13 = vadd.f32 %v553_v9, %v491_v4 }
 0x16d   :  { %v423_v55 = vadd.f32 %v422_v10, %v1229_v22  ;;  %v555_v50 = vadd.f32 %v554_v13, %v492_v20 }
 0x16f   :  { %v424_v15 = vadd.f32 %v423_v55, %v1251_v34  ;;  %v556_v59 = vadd.f32 %v555_v50, %v493_v41 }
 0x171   :  { %v557_v31 = vadd.f32 %v556_v59, %v494_v16  ;;  %v425_v17 = vadd.f32 %v424_v15, %v1272_v53 }
 0x173   :  { %v558_v61 = vadd.f32 %v557_v31, %v495_v63  ;;  %v426_v54 = vadd.f32 %v425_v17, %v1290_v51 }
 0x175   :  { %v559_v22 = vadd.f32 %v558_v61, %v496_v23  ;;  %v427_v58 = vadd.f32 %v426_v54, %v296_v3 }
 0x177   :  { %v560_v24 = vadd.f32 %v559_v22, %v497_v62  ;;  %v428_v25 = vadd.f32 %v427_v58, %v299_v33 }
 0x179   :  { %v429_v34 = vrot.slane %v428_v25, 4  ;;  %v561_v18 = vadd.f32 %v560_v24, %v498_v7 }
 0x17b   :  { %v430_v27 = vadd.f32 %v429_v34, %v428_v25  ;;  %v562_v28 = vrot.slane %v561_v18, 4 }
 0x17d   :  { %v431_v2 = vrot.slane %v430_v27, 2  ;;  %v563_v29 = vadd.f32 %v562_v28, %v561_v18 }
 0x17f   :  { %v432_v53 = vadd.f32 %v431_v2, %v430_v27  ;;  %v564_v12 = vrot.slane %v563_v29, 2 }
 0x181   :  { %v565_v14 = vadd.f32 %v564_v12, %v563_v29  ;;  %v433_v26 = vrot.slane %v432_v53, 1 }
 0x183   :  { %v566_v36 = vrot.slane %v565_v14, 1  ;;  %v434_v3 = vadd.f32 %v433_v26, %v432_v53 }
 0x185   :  { %v567_v51 = vadd.f32 %v566_v36, %v565_v14 }
 0x187   :  { %v572_v30 = vsel %vm571_vm0, %v567_v51, 0.0 }
 0x188   :  { %v573_v8 = vsel %vm570_vm1, %v434_v3, %v572_v30 }
 0x189   :  { %574 = vst [vmem:[%s1371_s3] sm:$0xff] %v573_v8 }

</bundles_post_ra>
